<compile_context>
chip_gen: v7x
topology: tpu7x:2x2x1
jax: 0.10.0
libtpu: 0.0.40
codegen_flags: <defaults>
</compile_context>

<pallas_src>
import math
import jax
import jax.numpy as jnp
from jax.experimental import pallas as pl
from jax.experimental.pallas import tpu as pltpu


def _embedder_kernel(x_ref, drop_ref, w1_ref, b1_ref, w2_ref, b2_ref, o_ref):
    # x_ref   : (Bt, Din)   tile of flattened input rows
    # drop_ref: (Bt, 1)     float mask, > 0.5 means "drop this row"
    # w1_ref  : (Din, 4H)   fc1 weight, transposed
    # b1_ref  : (1, 4H)     fc1 bias
    # w2_ref  : (4H, H)     fc2 weight, transposed
    # b2_ref  : (1, H)      fc2 bias
    # o_ref   : (Bt, H)
    x = x_ref[...].astype(jnp.float32)
    drop = drop_ref[...] > jnp.float32(0.5)                  # (Bt, 1) bool
    x = jnp.where(drop, jnp.float32(0.0), x)                 # zero dropped rows

    # fc1 + SiLU (sigmoid goes to the EUP slot, multiply on the VPU).
    h = jnp.dot(x, w1_ref[...].astype(jnp.float32),
                preferred_element_type=jnp.float32) + b1_ref[...].astype(jnp.float32)
    h = h * jax.nn.sigmoid(h)                                # SiLU

    # fc2
    out = jnp.dot(h, w2_ref[...].astype(jnp.float32),
                  preferred_element_type=jnp.float32) + b2_ref[...].astype(jnp.float32)

    o_ref[...] = out.astype(o_ref.dtype)


def _pick_row_tile(n_rows):
    """Largest row tile that divides n_rows and respects the (8, ...) sublane rule."""
    if n_rows % 8 != 0:
        return n_rows                       # single full-extent block
    for bt in (1024, 512, 256, 128, 64, 32, 16, 8):
        if n_rows % bt == 0:
            return bt
    return n_rows


def cluster_continuous_embedder(x, force_drop_id, w1, b1, w2, b2, *,
                                training=False, drop_condition=0.0,
                                rng_key=None, t=None):
    """x: (..., Din) f32; force_drop_id: (...,) bool.
    Weights in PyTorch layout: w1 (4H, Din), b1 (4H,), w2 (H, 4H), b2 (H,).
    `t` is accepted for API parity with the PyTorch forward but unused there too."""
    del t  # unused by the reference forward

    # Training-time random condition drop (done with jax.random in the wrapper;
    # the kernel itself is the deterministic forward).
    if training and drop_condition > 0:
        if rng_key is None:
            rng_key = jax.random.PRNGKey(0)
        drop_mask = jax.random.bernoulli(rng_key, drop_condition,
                                         force_drop_id.shape)
        force_drop_id = jnp.logical_or(force_drop_id, drop_mask)

    lead_shape = x.shape[:-1]
    din = x.shape[-1]
    h4, _ = w1.shape
    hidden = w2.shape[0]

    n_rows = 1
    for d in lead_shape:
        n_rows *= d

    x2 = x.reshape(n_rows, din)
    drop2 = force_drop_id.reshape(n_rows, 1).astype(jnp.float32)
    w1t = jnp.transpose(w1)                 # (Din, 4H)
    w2t = jnp.transpose(w2)                 # (4H, H)
    b1r = b1.reshape(1, h4)
    b2r = b2.reshape(1, hidden)

    bt = _pick_row_tile(n_rows)
    grid = (n_rows // bt,)

    out2 = pl.pallas_call(
        _embedder_kernel,
        out_shape=jax.ShapeDtypeStruct((n_rows, hidden), x.dtype),
        grid_spec=pltpu.PrefetchScalarGridSpec(
            num_scalar_prefetch=0,
            grid=grid,
            in_specs=[
                pl.BlockSpec((bt, din), lambda i: (i, 0)),       # x rows
                pl.BlockSpec((bt, 1), lambda i: (i, 0)),         # drop mask
                pl.BlockSpec((din, h4), lambda i: (0, 0)),       # W1^T (constant)
                pl.BlockSpec((1, h4), lambda i: (0, 0)),         # b1   (constant)
                pl.BlockSpec((h4, hidden), lambda i: (0, 0)),    # W2^T (constant)
                pl.BlockSpec((1, hidden), lambda i: (0, 0)),     # b2   (constant)
            ],
            out_specs=pl.BlockSpec((bt, hidden), lambda i: (i, 0)),
        ),
        compiler_params=pltpu.CompilerParams(
            dimension_semantics=("parallel",)),
    )(x2, drop2, w1t, b1r, w2t, b2r)

    return out2.reshape(*lead_shape, hidden)


def _reference(x, force_drop_id, w1, b1, w2, b2):
    xm = jnp.where(force_drop_id[..., None], jnp.zeros_like(x), x)
    h = xm @ w1.T + b1
    h = h * jax.nn.sigmoid(h)               # SiLU
    return h @ w2.T + b2


if __name__ == "__main__":
    # Small shapes consistent with the module: batch=8 rows, input_dims=16,
    # hidden_size=32 (so the intermediate 4H = 128 is lane-dense).
    B, input_dims, hidden_size = 8, 16, 32
    H4 = hidden_size * 4

    key = jax.random.PRNGKey(0)
    kx, kd, k1, kb1, k2, kb2 = jax.random.split(key, 6)

    x = jax.random.normal(kx, (B, input_dims), dtype=jnp.float32)
    force_drop_id = jax.random.uniform(kd, (B,)) > 0.5            # bool

    # Deterministic synthetic parameters (Linear-like scale), PyTorch layout.
    w1 = jax.random.normal(k1, (H4, input_dims), dtype=jnp.float32) / math.sqrt(input_dims)
    b1 = jax.random.normal(kb1, (H4,), dtype=jnp.float32) * 0.01
    w2 = jax.random.normal(k2, (hidden_size, H4), dtype=jnp.float32) / math.sqrt(H4)
    b2 = jax.random.normal(kb2, (hidden_size,), dtype=jnp.float32) * 0.01

    out = cluster_continuous_embedder(
        x, force_drop_id, w1, b1, w2, b2,
        training=False, drop_condition=0.1, t=None)
    out = jax.block_until_ready(out)

    ref = _reference(x, force_drop_id, w1, b1, w2, b2)
    assert out.shape == (B, hidden_size)
    assert jnp.allclose(out, ref, atol=1e-4, rtol=1e-4), "mismatch vs reference"

    # TODO(synk): for very large hidden sizes, feed bf16 weights/activations to
    # the MXU (keeping f32 accumulation + f32 SiLU) for 2-4x MXU throughput.
    print("KERNEL_OK")
</pallas_src>

<mosaic_0001>
module attributes {stable_mosaic.version = 11 : i64} {
  func.func @_embedder_kernel(%arg0: i32, %arg1: memref<8x16xf32, #tpu.memory_space<vmem>>, %arg2: memref<8x1xf32, #tpu.memory_space<vmem>>, %arg3: memref<16x128xf32, #tpu.memory_space<vmem>>, %arg4: memref<1x128xf32, #tpu.memory_space<vmem>>, %arg5: memref<128x32xf32, #tpu.memory_space<vmem>>, %arg6: memref<1x32xf32, #tpu.memory_space<vmem>>, %arg7: memref<8x32xf32, #tpu.memory_space<vmem>>) attributes {dimension_semantics = [#tpu.dimension_semantics<parallel>], iteration_bounds = array<i64: 1>, scalar_prefetch = 0 : i64, scratch_operands = 0 : i64, tpu.core_type = #tpu.core_type<tc>, window_params = [{transform_indices = @transform_0, window_bounds = array<i64: 8, 16>}, {transform_indices = @transform_1, window_bounds = array<i64: 8, 1>}, {pipeline_mode = #tpu.pipeline_mode<synchronous>, transform_indices = @transform_2, window_bounds = array<i64: 16, 128>}, {pipeline_mode = #tpu.pipeline_mode<synchronous>, transform_indices = @transform_3, window_bounds = array<i64: 1, 128>}, {pipeline_mode = #tpu.pipeline_mode<synchronous>, transform_indices = @transform_4, window_bounds = array<i64: 128, 32>}, {pipeline_mode = #tpu.pipeline_mode<synchronous>, transform_indices = @transform_5, window_bounds = array<i64: 1, 32>}, {transform_indices = @transform_6, window_bounds = array<i64: 8, 32>}]} {
    %c0 = arith.constant 0 : index
    %c0_0 = arith.constant 0 : index
    %0 = vector.load %arg1[%c0, %c0_0] : memref<8x16xf32, #tpu.memory_space<vmem>>, vector<8x16xf32>
    %c0_1 = arith.constant 0 : index
    %c0_2 = arith.constant 0 : index
    %1 = vector.load %arg2[%c0_1, %c0_2] : memref<8x1xf32, #tpu.memory_space<vmem>>, vector<8x1xf32>
    %cst = arith.constant 5.000000e-01 : f32
    %2 = vector.broadcast %cst : f32 to vector<8x1xf32>
    %3 = arith.cmpf ogt, %1, %2 : vector<8x1xf32>
    %cst_3 = arith.constant 0.000000e+00 : f32
    %4 = vector.shape_cast %3 : vector<8x1xi1> to vector<8x1xi1>
    %5 = vector.broadcast %4 : vector<8x1xi1> to vector<8x16xi1>
    %6 = vector.broadcast %cst_3 : f32 to vector<8x16xf32>
    %7 = arith.select %5, %6, %0 : vector<8x16xi1>, vector<8x16xf32>
    %c0_4 = arith.constant 0 : index
    %c0_5 = arith.constant 0 : index
    %8 = vector.load %arg3[%c0_4, %c0_5] : memref<16x128xf32, #tpu.memory_space<vmem>>, vector<16x128xf32>
    %cst_6 = arith.constant dense<0.000000e+00> : vector<8x128xf32>
    %9 = tpu.matmul %7, %8, %cst_6 {dimension_numbers = #tpu.dot_dimension_numbers<[1], [0], [0], [1], [0, 0, 1, 1], [], []>} : vector<8x16xf32>, vector<16x128xf32>, vector<8x128xf32> -> vector<8x128xf32>
    %c0_7 = arith.constant 0 : index
    %c0_8 = arith.constant 0 : index
    %10 = vector.load %arg4[%c0_7, %c0_8] : memref<1x128xf32, #tpu.memory_space<vmem>>, vector<1x128xf32>
    %11 = vector.broadcast %10 : vector<1x128xf32> to vector<8x128xf32>
    %12 = arith.addf %9, %11 : vector<8x128xf32>
    %13 = arith.negf %12 : vector<8x128xf32>
    %14 = math.exp %13 : vector<8x128xf32>
    %cst_9 = arith.constant 1.000000e+00 : f32
    %15 = vector.broadcast %cst_9 : f32 to vector<8x128xf32>
    %16 = arith.addf %15, %14 : vector<8x128xf32>
    %17 = arith.divf %15, %16 : vector<8x128xf32>
    %18 = arith.mulf %12, %17 : vector<8x128xf32>
    %c0_10 = arith.constant 0 : index
    %c0_11 = arith.constant 0 : index
    %19 = vector.load %arg5[%c0_10, %c0_11] : memref<128x32xf32, #tpu.memory_space<vmem>>, vector<128x32xf32>
    %cst_12 = arith.constant dense<0.000000e+00> : vector<8x32xf32>
    %20 = tpu.matmul %18, %19, %cst_12 {dimension_numbers = #tpu.dot_dimension_numbers<[1], [0], [0], [1], [0, 0, 1, 1], [], []>} : vector<8x128xf32>, vector<128x32xf32>, vector<8x32xf32> -> vector<8x32xf32>
    %c0_13 = arith.constant 0 : index
    %c0_14 = arith.constant 0 : index
    %21 = vector.load %arg6[%c0_13, %c0_14] : memref<1x32xf32, #tpu.memory_space<vmem>>, vector<1x32xf32>
    %22 = vector.broadcast %21 : vector<1x32xf32> to vector<8x32xf32>
    %23 = arith.addf %20, %22 : vector<8x32xf32>
    %c0_15 = arith.constant 0 : index
    %c0_16 = arith.constant 0 : index
    %24 = vector.load %arg7[%c0_15, %c0_16] : memref<8x32xf32, #tpu.memory_space<vmem>>, vector<8x32xf32>
    tpu.vector_store %arg7[%c0_15, %c0_16], %23 {strides = array<i32>} : memref<8x32xf32, #tpu.memory_space<vmem>>, vector<8x32xf32>,
    return
  }
  func.func @transform_0(%arg0: i32) -> (i32, i32) {
    %c0_i32 = arith.constant 0 : i32
    %c0_i32_0 = arith.constant 0 : i32
    return %arg0, %c0_i32 : i32, i32
  }
  func.func @transform_1(%arg0: i32) -> (i32, i32) {
    %c0_i32 = arith.constant 0 : i32
    %c0_i32_0 = arith.constant 0 : i32
    return %arg0, %c0_i32 : i32, i32
  }
  func.func @transform_2(%arg0: i32) -> (i32, i32) {
    %c0_i32 = arith.constant 0 : i32
    %c0_i32_0 = arith.constant 0 : i32
    %c0_i32_1 = arith.constant 0 : i32
    return %c0_i32, %c0_i32_0 : i32, i32
  }
  func.func @transform_3(%arg0: i32) -> (i32, i32) {
    %c0_i32 = arith.constant 0 : i32
    %c0_i32_0 = arith.constant 0 : i32
    %c0_i32_1 = arith.constant 0 : i32
    return %c0_i32, %c0_i32_0 : i32, i32
  }
  func.func @transform_4(%arg0: i32) -> (i32, i32) {
    %c0_i32 = arith.constant 0 : i32
    %c0_i32_0 = arith.constant 0 : i32
    %c0_i32_1 = arith.constant 0 : i32
    return %c0_i32, %c0_i32_0 : i32, i32
  }
  func.func @transform_5(%arg0: i32) -> (i32, i32) {
    %c0_i32 = arith.constant 0 : i32
    %c0_i32_0 = arith.constant 0 : i32
    %c0_i32_1 = arith.constant 0 : i32
    return %c0_i32, %c0_i32_0 : i32, i32
  }
  func.func @transform_6(%arg0: i32) -> (i32, i32) {
    %c0_i32 = arith.constant 0 : i32
    %c0_i32_0 = arith.constant 0 : i32
    return %arg0, %c0_i32 : i32, i32
  }
}

</mosaic_0001>

<bundles_post_ra>
// kernel: tpu_custom_call.1
= control target key start
LH: loop header
LB: loop body
LE: loop exit
PB: predicated region body
PF: predicated region fallthrough
CT: control target
= control target key end

     0   :  { %v359_v3 = vmov 0   ;;  %v360_v4 = vmov 0.0|0.0   ;;  %s477_s0 = inlined_call_operand.vmem [shape: f32[8,16], index: 0, kind: input, shape index: {}]   ;;  %s478_s1 = inlined_call_operand.vmem [shape: f32[8,1], index: 1, kind: input, shape index: {}]   ;;  %s479_s2 = inlined_call_operand.vmem [shape: f32[16,128], index: 2, kind: input, shape index: {}]   ;;  %s480_s3 = inlined_call_operand.vmem [shape: f32[1,128], index: 3, kind: input, shape index: {}]   ;;  %s481_s4 = inlined_call_operand.vmem [shape: f32[128,32], index: 4, kind: input, shape index: {}]   ;;  %s482_s5 = inlined_call_operand.vmem [shape: f32[1,32], index: 5, kind: input, shape index: {}]   ;;  %s483_s6 = inlined_call_operand.hbm [shape: f32[8,32], index: 6, kind: output, shape index: {}]  }
   0x1   :  { %v25_v0 = vld [vmem:[%s478_s1] sm:$0xff]  ;;  %v34_v2 = vld [vmem:[%s479_s2 + $0x8] sm:$0xff]  ;;  %330 = vset.pattern.permute.xlu0 %v359_v3  ;;  %298 = vmatprep.subr.bf16.mxu0 %v360_v4 }
   0x2   :  { %v33_v1 = vld [vmem:[%s479_s2] sm:$0xff]  ;;  %vm26_vm0 = vcmp.gt.f32.partialorder %v25_v0, 0.5 }
   0x3   :  { %v299_v5 = vpack.c.bf16 %v34_v2, %v33_v1 }
   0x4   :  { %11 = vsyncpa [#allocation3], 0  ;;  %v27_v6 = vsel %vm26_vm0, 1, %v359_v3  ;;  %301 = vmatprep.subr.bf16.mxu1 %v360_v4  ;;  %vm361_vm1 = vmmov 0   ;;  %v362_v7 = vmov 0.0   ;;  %v24_v8 = vld [vmem:[%s477_s0] sm:$0xff] }
   0x5   :  { %29 = vperm.xlu0 %330, %v27_v6   ;;  %300 = vmatpush3.bf16.msra.mxu0 %v299_v5  ;;  %vm42_vm2 = vcmask 130048   ;;  %v123_v11 = vld [vmem:[%s481_s4] sm:$0xff]  ;;  %v124_v12 = vld [vmem:[%s481_s4 + $0x8] sm:$0xff]  ;;  %v125_v14 = vld [vmem:[%s481_s4 + $0x10] sm:$0xff]  ;;  %vm216_vm4 = vcmask 261120  }
   0x6   :  { %260 = vmatprep.mubr.msk.f32.mxu0 %vm361_vm1, %v362_v7  ;;  %295 = vmatprep.mubr.msk.f32.mxu1 %vm361_vm1, %v362_v7  ;;  %v302_v13 = vpack.c.bf16 %v124_v12, %v123_v11  ;;  %v126_v15 = vld [vmem:[%s481_s4 + $0x18] sm:$0xff]  ;;  %v127_v17 = vld [vmem:[%s481_s4 + $0x20] sm:$0xff]  ;;  %v128_v18 = vld [vmem:[%s481_s4 + $0x28] sm:$0xff] }
   0x7   :  { %v305_v16 = vpack.c.bf16 %v126_v15, %v125_v14  ;;  %v308_v19 = vpack.c.bf16 %v128_v18, %v127_v17  ;;  %v129_v20 = vld [vmem:[%s481_s4 + $0x30] sm:$0xff]  ;;  %v130_v21 = vld [vmem:[%s481_s4 + $0x38] sm:$0xff]  ;;  %v131_v23 = vld [vmem:[%s481_s4 + $0x40] sm:$0xff] }
   0x8   :  { %303 = vmatpush3.bf16.msra.mxu1 %v302_v13  ;;  %v311_v22 = vpack.c.bf16 %v130_v21, %v129_v20  ;;  %v132_v24 = vld [vmem:[%s481_s4 + $0x48] sm:$0xff]  ;;  %v133_v26 = vld [vmem:[%s481_s4 + $0x50] sm:$0xff]  ;;  %v134_v27 = vld [vmem:[%s481_s4 + $0x58] sm:$0xff] }
   0x9   :  { %304 = vmatprep.subr.bf16.mxu1 %v360_v4  ;;  %v314_v25 = vpack.c.bf16 %v132_v24, %v131_v23  ;;  %v317_v28 = vpack.c.bf16 %v134_v27, %v133_v26  ;;  %v135_v29 = vld [vmem:[%s481_s4 + $0x60] sm:$0xff]  ;;  %v136_v30 = vld [vmem:[%s481_s4 + $0x68] sm:$0xff]  ;;  %v137_v32 = vld [vmem:[%s481_s4 + $0x70] sm:$0xff] }
   0xa   :  { %v320_v31 = vpack.c.bf16 %v136_v30, %v135_v29  ;;  %v138_v33 = vld [vmem:[%s481_s4 + $0x78] sm:$0xff]  ;;  %v232_v35 = vld [vmem:[%s480_s3] ss:$0 sm:$0xff]  ;;  %s363_s4 = smov [#allocation2]  }
   0xb   :  { %v323_v34 = vpack.c.bf16 %v138_v33, %v137_v32  ;;  %v235_v44 = vld [vmem:[%s482_s5] ss:$0 sm:$0xff]  ;;  %s224_s11 = sshll.u32 %s363_s4, 4  ;;  %s225_s11 = int_to_ptr.vmem [resolvable:$true] %s224_s11 }
   0xc   :  { %306 = vmatpush3.bf16.msra.mxu1 %v305_v16  ;;  %s335_s3 = scalar_lea.vmem %s225_s11, 128  ;;  %p340_p1 = scmp.lt.s32.totalorder %s225_s11, %s225_s11 }
   0xd   :  { %307 = vmatprep.subr.bf16.mxu1 %v360_v4  ;;  %p336_p0 = scmp.ne.s32.totalorder %s225_s11, %s335_s3  ;;  %p341_p2 = scmp.lt.s32.totalorder %s335_s3, %s335_s3 }
   0xf   :  { %p342_p3 = por %p341_p2, %p340_p1 }
  0x10   :  { %309 = vmatpush3.bf16.msra.mxu1 %v308_v19 }
  0x11   :  { %310 = vmatprep.subr.bf16.mxu1 %v360_v4  ;;  %p343_p4 = pnand %p342_p3, %p336_p0 }
  0x14   :  { %312 = vmatpush3.bf16.msra.mxu1 %v311_v22 }
  0x15   :  { %313 = vmatprep.subr.bf16.mxu1 %v360_v4 }
  0x18   :  { %315 = vmatpush3.bf16.msra.mxu1 %v314_v25 }
  0x19   :  { %316 = vmatprep.subr.bf16.mxu1 %v360_v4 }
  0x1c   :  { %318 = vmatpush3.bf16.msra.mxu1 %v317_v28 }
  0x1d   :  { %319 = vmatprep.subr.bf16.mxu1 %v360_v4 }
  0x20   :  { %321 = vmatpush3.bf16.msra.mxu1 %v320_v31 }
  0x21   :  { %322 = vmatprep.subr.bf16.mxu1 %v360_v4 }
  0x24   :  { %324 = vmatpush3.bf16.msra.mxu1 %v323_v34 }
  0x84   :  { %v30_v9 = vpop.permute.xlu0 %29 }
  0x85   :  { %vm31_vm3 = vcmp.eq.s32.totalorder %v30_v9, 1 }
  0x86   :  { %v32_v10 = vsel %vm31_vm3, 0.0, %v24_v8 }
  0x87   :  { %261 = vmatmul.mubr.msk.f32.vlgmr.msra.gmra.mrb[0].mxu0 %vm42_vm2, %v32_v10 }
 0x15a   :  { %v112_v36 = vpop.f32.mrb[0].mxu0 }
 0x15b   :  { %v113_v37 = vadd.f32 %v232_v35, %v112_v36  ;;  %v262_v38 = vpop.f32.mrb[1].mxu0 }
 0x15d   :  { %v234_v39 = vmul.f32 -1.442695, %v113_v37 }
 0x15f   :  { %331 = vpow2.f32 %v234_v39 }
 0x169   :  { %v332_v40 = vpop.eup %331 }
 0x16a   :  { %v119_v41 = vadd.f32 1.0, %v332_v40 }
 0x16c   :  { %333 = vrcp.f32 %v119_v41 }
 0x176   :  { %v334_v42 = vpop.eup %333 }
 0x177   :  { %v122_v43 = vmul.f32 %v334_v42, %v113_v37 }
 0x179   :  { %296 = vmatmul.mubr.f32.vlgmr.msra.gmra.mrb[0].mxu1 %v122_v43 }
 0x24c   :  { %v212_v45 = vpop.f32.mrb[0].mxu1 }
 0x24d   :  { %v213_v46 = vadd.f32 %v235_v44, %v212_v45  ;;  %v297_v47 = vpop.f32.mrb[1].mxu1 }
 0x24f   :  { %217 = vst.msk [vmem:[#allocation2] sm:$0xff] %vm216_vm4, %v213_v46 }
 0x250   :  { %346 = shalt.err (!%p343_p4)
}
 0x251   :  { %s347_s14 = scalar_lea.hbm %s483_s6, 128 }
 0x252   :  { %p348_p5 = scmp.ne.s32.totalorder %s483_s6, %s347_s14  ;;  %p351_p6 = scmp.lt.u32.totalorder %s347_s14, %s483_s6 }
 0x254   :  { %p353_p7 = pnand %p351_p6, %p348_p5 }
 0x256   :  { %356 = shalt.err (!%p353_p7)
}
 0x257   :  { %227 = dma.vmem_to_hbm [thread:$0]  %s225_s11, 128, %s483_s6, [#allocation3]  }
 0x258   :  { %357 = dma.done.wait [#allocation3], 128  }
 0x259   :  { %358 = vsyncadd [#allocation3], 4294967168 }
 0x25a   :  { %231 = vsyncpa [#allocation3], 1 }

</bundles_post_ra>
